<compile_context>
chip_gen: v7x
topology: tpu7x:2x2x1
jax: 0.10.0
libtpu: 0.0.40
codegen_flags: <defaults>
</compile_context>

<pallas_src>
import jax
import jax.numpy as jnp
from jax.experimental import pallas as pl
from jax.experimental.pallas import tpu as pltpu

_LANES = 128


def _round_up(v, m):
    return ((v + m - 1) // m) * m


def _pick_tile_rows(rows, tile_rows):
    """Clamp the row-tile to the data, keep >=2 grid steps when possible
    (megacore on v7x), and force a multiple of 8 (BlockSpec (8,128) rule)."""
    tile = min(tile_rows, _round_up(rows, 8))
    if _round_up(rows, 8) > 8:
        # Enough data to split: cap the tile so the grid has at least 2 steps.
        tile = min(tile, _round_up(pl.cdiv(rows, 2), 8))
    return _round_up(max(tile, 8), 8)


def _ann_kernel(params_ref, x_ref, o_ref):
    # 5 scalar parameters from SMEM (scalar slots; keeps vld slots free for x).
    w00 = params_ref[0]   # input.weight[0, 0]
    w01 = params_ref[1]   # input.weight[0, 1]
    b1 = params_ref[2]    # input.bias[0]
    w2 = params_ref[3]    # output.weight[0, 0]
    b2 = params_ref[4]    # output.bias[0]

    x0 = x_ref[0]         # (tile_rows, 128) lane-dense feature-0 plane
    x1 = x_ref[1]         # (tile_rows, 128) lane-dense feature-1 plane

    # Linear(2 -> 1) as two VPU multiply-adds, then ReLU.
    h = jnp.maximum(x0 * w00 + x1 * w01 + b1, 0.0)
    # Linear(1 -> 1).
    y = h * w2 + b2
    # Exact sigmoid: exp lands on the EUP, exact divide on the VPU.
    # (HBM-bound kernel -> the exact divide is free; approx reciprocal removed.)
    o_ref[...] = 1.0 / (1.0 + jnp.exp(-y))


def ann_forward_planar(x_planes, w1, b1, w2, b2, *, tile_rows=2048):
    """Planar fast path (review option (a)): x_planes is (2, rows, 128) f32 with
    x_planes[f, r, l] = feature f of sample r*128 + l. No wrapper-side layout
    work at all. Returns (rows, 128) f32 outputs in the same flat sample order."""
    nf, rows, lanes = x_planes.shape
    assert nf == 2 and lanes == _LANES
    x_planes = x_planes.astype(jnp.float32)

    tile = _pick_tile_rows(rows, tile_rows)
    rows_pad = _round_up(rows, tile)
    if rows_pad != rows:
        x_planes = jnp.pad(x_planes, ((0, 0), (0, rows_pad - rows), (0, 0)))
    grid = rows_pad // tile

    # Pack the 5 scalar parameters into one small SMEM vector.
    params = jnp.concatenate([
        jnp.reshape(w1, (-1,)), jnp.reshape(b1, (-1,)),
        jnp.reshape(w2, (-1,)), jnp.reshape(b2, (-1,)),
    ]).astype(jnp.float32)                                   # (5,)

    # One fused input block -> one DMA per grid step for both feature planes.
    in_spec = pl.BlockSpec((2, tile, _LANES), lambda i: (0, i, 0))
    out_spec = pl.BlockSpec((tile, _LANES), lambda i: (i, 0))

    # VMEM at tile=2048: (2 MiB in + 1 MiB out) * 2 buffers = 6 MiB -> fits the
    # default scoped VMEM limit on v5e/v6e/v7x, no vmem_limit_bytes needed.
    out = pl.pallas_call(
        _ann_kernel,
        out_shape=jax.ShapeDtypeStruct((rows_pad, _LANES), jnp.float32),
        grid=(grid,),
        in_specs=[
            pl.BlockSpec(memory_space=pltpu.MemorySpace.SMEM),  # params
            in_spec,                                            # (2, tile, 128)
        ],
        out_specs=out_spec,
        compiler_params=pltpu.CompilerParams(
            dimension_semantics=("parallel",),
        ),
    )(params, x_planes)

    return out[:rows] if rows_pad != rows else out


def ann_forward(x, w1, b1, w2, b2, *, tile_rows=2048):
    """PyTorch-layout entry point: x (N, 2) f32 -> (N, 1) f32.
    Does one fused transpose+pad to build the planar slab; callers that can
    supply planar (2, R, 128) data should use ann_forward_planar directly and
    skip this pass. The trailing un-pad slice is a no-op when N % 128 == 0."""
    n = x.shape[0]
    rows = max(pl.cdiv(n, _LANES), 1)
    tile = _pick_tile_rows(rows, tile_rows)
    rows_pad = _round_up(rows, tile)
    n_pad = rows_pad * _LANES

    xt = jnp.pad(jnp.transpose(x.astype(jnp.float32)), ((0, 0), (0, n_pad - n)))
    x_planes = xt.reshape(2, rows_pad, _LANES)

    out = ann_forward_planar(x_planes, w1, b1, w2, b2, tile_rows=tile)
    return out.reshape(n_pad)[:n].reshape(n, 1)


def init_params(key):
    """Deterministic parameter init mimicking PyTorch Linear shapes/ranges."""
    k1, k2, k3, k4 = jax.random.split(key, 4)
    bound1 = 1.0 / jnp.sqrt(2.0)
    w1 = jax.random.uniform(k1, (1, 2), jnp.float32, -bound1, bound1)  # input.weight
    b1 = jax.random.uniform(k2, (1,), jnp.float32, -bound1, bound1)    # input.bias
    w2 = jax.random.uniform(k3, (1, 1), jnp.float32, -1.0, 1.0)        # output.weight
    b2 = jax.random.uniform(k4, (1,), jnp.float32, -1.0, 1.0)          # output.bias
    return w1, b1, w2, b2


def reference_forward(x, w1, b1, w2, b2):
    """Pure-JAX reference matching the PyTorch module semantics."""
    h = jnp.maximum(x @ w1.T + b1, 0.0)
    y = h @ w2.T + b2
    return jax.nn.sigmoid(y)


if __name__ == "__main__":
    key = jax.random.PRNGKey(0)
    kx, kx2, kx3, kp = jax.random.split(key, 4)
    w1, b1, w2, b2 = init_params(kp)

    fwd = jax.jit(ann_forward)

    # Tiny batch (module implies 2 input features).
    x = jax.random.normal(kx, (8, 2), jnp.float32)
    out = jax.block_until_ready(fwd(x, w1, b1, w2, b2))
    ref = reference_forward(x, w1, b1, w2, b2)
    assert out.shape == (8, 1)
    assert jnp.allclose(out, ref, atol=1e-5, rtol=0.0), "mismatch vs reference (N=8)"

    # Ragged batch: exercises padding.
    x2 = jax.random.normal(kx2, (1000, 2), jnp.float32)
    out2 = jax.block_until_ready(fwd(x2, w1, b1, w2, b2))
    ref2 = reference_forward(x2, w1, b1, w2, b2)
    assert out2.shape == (1000, 1)
    assert jnp.allclose(out2, ref2, atol=1e-5, rtol=0.0), "mismatch vs reference (N=1000)"

    # Aligned batch: multi-step grid (>=2 steps for megacore), slice is a no-op.
    x3 = jax.random.normal(kx3, (4096, 2), jnp.float32)
    out3 = jax.block_until_ready(fwd(x3, w1, b1, w2, b2))
    ref3 = reference_forward(x3, w1, b1, w2, b2)
    assert out3.shape == (4096, 1)
    assert jnp.allclose(out3, ref3, atol=1e-5, rtol=0.0), "mismatch vs reference (N=4096)"

    print("KERNEL_OK")
</pallas_src>

<mosaic_0001>
module attributes {stable_mosaic.version = 11 : i64} {
  func.func @_ann_kernel(%arg0: i32, %arg1: memref<5xf32, #tpu.memory_space<smem>>, %arg2: memref<2x8x128xf32, #tpu.memory_space<vmem>>, %arg3: memref<8x128xf32, #tpu.memory_space<vmem>>) attributes {dimension_semantics = [#tpu.dimension_semantics<parallel>], iteration_bounds = array<i64: 1>, scalar_prefetch = 0 : i64, scratch_operands = 0 : i64, tpu.core_type = #tpu.core_type<tc>, window_params = [{transform_indices = @transform_0, window_bounds = array<i64: 5>}, {transform_indices = @transform_1, window_bounds = array<i64: 2, 8, 128>}, {transform_indices = @transform_2, window_bounds = array<i64: 8, 128>}]} {
    %c0 = arith.constant 0 : index
    %0 = memref.load %arg1[%c0] : memref<5xf32, #tpu.memory_space<smem>>
    %c1 = arith.constant 1 : index
    %1 = memref.load %arg1[%c1] : memref<5xf32, #tpu.memory_space<smem>>
    %c2 = arith.constant 2 : index
    %2 = memref.load %arg1[%c2] : memref<5xf32, #tpu.memory_space<smem>>
    %c3 = arith.constant 3 : index
    %3 = memref.load %arg1[%c3] : memref<5xf32, #tpu.memory_space<smem>>
    %c4 = arith.constant 4 : index
    %4 = memref.load %arg1[%c4] : memref<5xf32, #tpu.memory_space<smem>>
    %c0_0 = arith.constant 0 : index
    %c0_1 = arith.constant 0 : index
    %c0_2 = arith.constant 0 : index
    %5 = vector.load %arg2[%c0_0, %c0_1, %c0_2] : memref<2x8x128xf32, #tpu.memory_space<vmem>>, vector<1x8x128xf32>
    %6 = vector.shape_cast %5 : vector<1x8x128xf32> to vector<8x128xf32>
    %c1_3 = arith.constant 1 : index
    %c0_4 = arith.constant 0 : index
    %c0_5 = arith.constant 0 : index
    %7 = vector.load %arg2[%c1_3, %c0_4, %c0_5] : memref<2x8x128xf32, #tpu.memory_space<vmem>>, vector<1x8x128xf32>
    %8 = vector.shape_cast %7 : vector<1x8x128xf32> to vector<8x128xf32>
    %9 = vector.broadcast %0 : f32 to vector<8x128xf32>
    %10 = arith.mulf %6, %9 : vector<8x128xf32>
    %11 = vector.broadcast %1 : f32 to vector<8x128xf32>
    %12 = arith.mulf %8, %11 : vector<8x128xf32>
    %13 = arith.addf %10, %12 : vector<8x128xf32>
    %14 = vector.broadcast %2 : f32 to vector<8x128xf32>
    %15 = arith.addf %13, %14 : vector<8x128xf32>
    %cst = arith.constant 0.000000e+00 : f32
    %16 = vector.broadcast %cst : f32 to vector<8x128xf32>
    %17 = arith.maximumf %15, %16 : vector<8x128xf32>
    %18 = vector.broadcast %3 : f32 to vector<8x128xf32>
    %19 = arith.mulf %17, %18 : vector<8x128xf32>
    %20 = vector.broadcast %4 : f32 to vector<8x128xf32>
    %21 = arith.addf %19, %20 : vector<8x128xf32>
    %cst_6 = arith.constant 0.000000e+00 : f32
    %22 = vector.broadcast %cst_6 : f32 to vector<8x128xf32>
    %23 = arith.subf %22, %21 : vector<8x128xf32>
    %24 = math.exp %23 : vector<8x128xf32>
    %cst_7 = arith.constant 1.000000e+00 : f32
    %25 = vector.broadcast %cst_7 : f32 to vector<8x128xf32>
    %26 = arith.addf %25, %24 : vector<8x128xf32>
    %cst_8 = arith.constant 1.000000e+00 : f32
    %27 = vector.broadcast %cst_8 : f32 to vector<8x128xf32>
    %28 = arith.divf %27, %26 : vector<8x128xf32>
    %c0_9 = arith.constant 0 : index
    %c0_10 = arith.constant 0 : index
    %29 = vector.load %arg3[%c0_9, %c0_10] : memref<8x128xf32, #tpu.memory_space<vmem>>, vector<8x128xf32>
    tpu.vector_store %arg3[%c0_9, %c0_10], %28 {strides = array<i32>} : memref<8x128xf32, #tpu.memory_space<vmem>>, vector<8x128xf32>,
    return
  }
  func.func @transform_0(%arg0: i32) -> i32 {
    %c0_i32 = arith.constant 0 : i32
    %c0_i32_0 = arith.constant 0 : i32
    return %c0_i32 : i32
  }
  func.func @transform_1(%arg0: i32) -> (i32, i32, i32) {
    %c0_i32 = arith.constant 0 : i32
    %c0_i32_0 = arith.constant 0 : i32
    %c0_i32_1 = arith.constant 0 : i32
    return %c0_i32, %arg0, %c0_i32_0 : i32, i32, i32
  }
  func.func @transform_2(%arg0: i32) -> (i32, i32) {
    %c0_i32 = arith.constant 0 : i32
    %c0_i32_0 = arith.constant 0 : i32
    return %arg0, %c0_i32 : i32, i32
  }
}

</mosaic_0001>

<bundles_post_ra>
// kernel: ann_forward.1
= control target key start
LH: loop header
LB: loop body
LE: loop exit
PB: predicated region body
PF: predicated region fallthrough
CT: control target
= control target key end

     0   :  { %7 = vsyncpa [#allocation3], 0  ;;  %s108_s0 = inlined_call_operand.vmem [shape: f32[5], index: 0, kind: input, shape index: {}]   ;;  %s109_s1 = inlined_call_operand.vmem [shape: f32[2,8,128], index: 1, kind: input, shape index: {}]   ;;  %s110_s2 = inlined_call_operand.vmem [shape: f32[8,128], index: 2, kind: output, shape index: {}]  }
   0x1   :  { %s14_s11 = sshll.u32 %s108_s0, 4  ;;  %s15_s11 = int_to_ptr.vmem [resolvable:$true] %s14_s11 }
   0x2   :  { %s66_s12 = scalar_lea.vmem %s15_s11, 16  ;;  %p71_p1 = scmp.lt.s32.totalorder %s15_s11, %s15_s11 }
   0x3   :  { %p67_p0 = scmp.ne.s32.totalorder %s15_s11, %s66_s12  ;;  %p72_p2 = scmp.lt.s32.totalorder %s66_s12, %s66_s12 }
   0x5   :  { %p73_p3 = por %p72_p2, %p71_p1 }
   0x7   :  { %p74_p4 = pnand %p73_p3, %p67_p0 }
   0x9   :  { %77 = shalt.err (!%p74_p4)
}
   0xa   :  { %s80_s13 = smov [#allocation2]  }
   0xb   :  { %17 = dma.vmem_to_smem %s15_s11, 16, %s80_s13, [#allocation3]  }
   0xc   :  { %78 = dma.done.wait [#allocation3], 16  }
   0xd   :  { %79 = vsyncadd [#allocation3], 4294967280 }
   0xe   :  { %23 = sfence }
   0xf   :  { %s24_s14 = sld [smem:[#allocation2]]  ;;  %s56_s15 = sld [smem:[#allocation2 + $0x1]]  ;;  %v29_v0 = vld [vmem:[%s109_s1] sm:$0xff]  ;;  %v60_v1 = vld [vmem:[%s109_s1 + $0x8] sm:$0xff] }
  0x10   :  { %s57_s16 = sld [smem:[#allocation2 + $0x2]]  ;;  %s58_s17 = sld [smem:[#allocation2 + $0x3]] }
  0x11   :  { %s59_s21 = sld [smem:[#allocation2 + $0x4]] }
  0x15   :  { %v32_v2 = vstv %s24_s14  ;;  %v34_v3 = vstv %s56_s15 }
  0x16   :  { %v33_v4 = vmul.f32 %v32_v2, %v29_v0  ;;  %v35_v5 = vmul.f32 %v60_v1, %v34_v3  ;;  %v37_v6 = vstv %s57_s16  ;;  %v40_v9 = vstv %s58_s17 }
  0x17   :  { %v42_v11 = vstv %s59_s21 }
  0x18   :  { %v36_v7 = vadd.f32 %v35_v5, %v33_v4 }
  0x1a   :  { %v38_v8 = vadd.f32 %v37_v6, %v36_v7 }
  0x1c   :  { %v39_v10 = vmax.f32 %v38_v8, 0.0 }
  0x1e   :  { %v41_v12 = vmul.f32 %v40_v9, %v39_v10 }
  0x20   :  { %v43_v13 = vadd.f32 %v42_v11, %v41_v12 }
  0x22   :  { %v44_v14 = vsub.f32 0.0, %v43_v13 }
  0x24   :  { %v45_v15 = vmul.f32 1.442695, %v44_v14 }
  0x26   :  { %62 = vpow2.f32 %v45_v15 }
  0x30   :  { %v63_v16 = vpop.eup %62 }
  0x31   :  { %v47_v17 = vadd.f32 1.0, %v63_v16 }
  0x33   :  { %64 = vrcp.f32 %v47_v17 }
  0x3d   :  { %v65_v18 = vpop.eup %64 }
  0x3e   :  { %50 = vst [vmem:[%s110_s2] sm:$0xff] %v65_v18 }
  0x3f   :  { %55 = vsyncpa [#allocation3], 1 }

</bundles_post_ra>
